<compile_context>
chip_gen: v5e
topology: v5e:2x2
jax: 0.10.0
libtpu: 0.0.40
codegen_flags: <defaults>
</compile_context>

<pallas_src>
import jax
import jax.numpy as jnp
from jax.experimental import pallas as pl
from jax.experimental.pallas import tpu as pltpu


def _round_up(x, m):
    return ((x + m - 1) // m) * m


def _choose_tile(batch, tile_b):
    """Pick a lane-friendly batch tile and padded batch size."""
    b128 = _round_up(max(batch, 1), 128)
    tile = max(128, min((tile_b // 128) * 128, b128))
    n_steps = -(-b128 // tile)
    # v7x has two TensorCores sharing the "parallel" batch axis: make sure the
    # grid has at least 2 steps whenever the batch allows it (otherwise one
    # core idles).  No-op when the whole batch fits a single 128-row tile.
    if n_steps == 1 and b128 >= 256:
        n_steps = 2
    tile = _round_up(-(-b128 // n_steps), 128)
    return tile, tile * n_steps


# -----------------------------------------------------------------------------
# Pallas kernel: one batch tile, batch-major (TILE_B, features) layout.
# -----------------------------------------------------------------------------
def movie_rec_kernel(
    x_ref,    # (TILE_B, F_in)  concat([user_vec, item_vec, genre]), compute dtype
    w1_ref,   # (F_in, 128)     fc1 weight with genre_fc folded in
    b1_ref,   # (1, 128)        fc1 bias with genre_fc bias folded in (f32)
    w2_ref,   # (128, 64)       fc2 weight with bn1 folded in
    b2_ref,   # (1, 64)         fc2 bias with bn1 folded in (f32)
    w3_ref,   # (1, 64)         fc3 weight row with bn2 folded in (f32)
    b3_ref,   # (1, 1)          fc3 bias with bn2 folded in (f32)
    out_ref,  # (TILE_B, 1)     scores (f32)
):
    cdtype = w1_ref.dtype

    # fc1 (+ folded genre_fc) + ReLU.  Bias/ReLU epilogue in f32 (v5e has no
    # bf16 VALU); the downcast right after halves the live bytes of the
    # (TILE_B, 128) intermediate and feeds the bf16 fc2 MXU pass.
    h1 = jnp.dot(x_ref[...], w1_ref[...], preferred_element_type=jnp.float32)
    h1 = jnp.maximum(h1 + b1_ref[...], 0.0).astype(cdtype)
    # dropout1: identity in inference mode

    # fc2 (+ folded bn1) + ReLU, kept in f32 for the fc3 accumulation.
    h2 = jnp.dot(h1, w2_ref[...], preferred_element_type=jnp.float32)
    h2 = jnp.maximum(h2 + b2_ref[...], 0.0)
    # dropout2: identity in inference mode

    # fc3 (+ folded bn2) off the MXU: an N=1 matmul costs a full MXU streaming
    # pass for 64 MACs/row, so use a VPU broadcast-multiply + lane reduction
    # (f32 accumulation) on units that otherwise idle under the MXU work.
    out = jnp.sum(h2 * w3_ref[...], axis=1, keepdims=True) + b3_ref[...]
    out_ref[...] = out


# -----------------------------------------------------------------------------
# One-time parameter folding (eval mode): genre_fc -> fc1, bn1 -> fc2, bn2 -> fc3.
# -----------------------------------------------------------------------------
def fold_inference_params(params, *, eps=1e-5, compute_dtype=jnp.bfloat16):
    E = params["user_emb"].shape[1]
    w1 = params["w1"]                                   # (3E, 128), (in, out)
    w1_u, w1_i, w1_g = w1[:E], w1[E:2 * E], w1[2 * E:]

    # genre_fc folded into fc1 (exact: no nonlinearity in between)
    w1_fold = jnp.concatenate([w1_u, w1_i, params["wg"] @ w1_g], axis=0)  # (2E+G, 128)
    b1_fold = params["b1"] + params["bg"] @ w1_g                          # (128,)

    # eval-mode BatchNorm = per-feature affine after ReLU; commutes into next linear
    s1 = params["bn1_gamma"] / jnp.sqrt(params["bn1_var"] + eps)
    t1 = params["bn1_beta"] - params["bn1_mean"] * s1
    w2_fold = s1[:, None] * params["w2"]                                  # (128, 64)
    b2_fold = params["b2"] + t1 @ params["w2"]                            # (64,)

    s2 = params["bn2_gamma"] / jnp.sqrt(params["bn2_var"] + eps)
    t2 = params["bn2_beta"] - params["bn2_mean"] * s2
    w3_fold = s2[:, None] * params["w3"]                                  # (64, 1)
    b3_fold = params["b3"] + t2 @ params["w3"]                            # (1,)

    return {
        "user_emb": params["user_emb"].astype(compute_dtype),
        "item_emb": params["item_emb"].astype(compute_dtype),
        "w1f": w1_fold.astype(compute_dtype),                  # (2E+G, 128)
        "b1r": b1_fold.reshape(1, -1).astype(jnp.float32),     # (1, 128)
        "w2f": w2_fold.astype(compute_dtype),                  # (128, 64)
        "b2r": b2_fold.reshape(1, -1).astype(jnp.float32),     # (1, 64)
        "w3r": w3_fold.reshape(1, -1).astype(jnp.float32),     # (1, 64)  f32 for VPU fc3
        "b3r": b3_fold.reshape(1, 1).astype(jnp.float32),      # (1, 1)
    }


# -----------------------------------------------------------------------------
# Forward wrapper: minimal XLA glue (gather + concat at padded size) -> kernel.
# -----------------------------------------------------------------------------
def movie_rec_forward(user, item, genre, fparams, *, tile_b=8192):
    B = user.shape[0]
    cdtype = fparams["w1f"].dtype
    f_in = fparams["w1f"].shape[0]     # 2E + G
    n_h1 = fparams["w1f"].shape[1]     # 128
    n_h2 = fparams["w2f"].shape[1]     # 64

    tile_b, b_pad = _choose_tile(B, tile_b)

    # Pad only the tiny per-example inputs (indices + genre) so the gathered
    # activation slab is allocated directly at the padded size — no jnp.pad
    # pass over the (B, F) activations and no host-side transpose.
    if b_pad != B:
        pad = b_pad - B
        user = jnp.pad(user, (0, pad))
        item = jnp.pad(item, (0, pad))
        genre = jnp.pad(genre, ((0, pad), (0, 0)))

    # Embedding row gathers stay in XLA (pure indexing glue) on bf16 tables;
    # the concat fuses with them into one (B_pad, F) compute-dtype slab that
    # the kernel reads batch-major (see TODO at top for full gather fusion).
    user_vec = jnp.take(fparams["user_emb"], user, axis=0)     # (B_pad, E)
    item_vec = jnp.take(fparams["item_emb"], item, axis=0)     # (B_pad, E)
    x = jnp.concatenate([user_vec, item_vec, genre.astype(cdtype)], axis=1)

    grid = (b_pad // tile_b,)
    out = pl.pallas_call(
        movie_rec_kernel,
        out_shape=jax.ShapeDtypeStruct((b_pad, 1), jnp.float32),
        grid=grid,
        in_specs=[
            pl.BlockSpec((tile_b, f_in), lambda i: (i, 0)),     # batch-tiled input
            pl.BlockSpec((f_in, n_h1), lambda i: (0, 0)),       # weights stay resident
            pl.BlockSpec((1, n_h1), lambda i: (0, 0)),
            pl.BlockSpec((n_h1, n_h2), lambda i: (0, 0)),
            pl.BlockSpec((1, n_h2), lambda i: (0, 0)),
            pl.BlockSpec((1, n_h2), lambda i: (0, 0)),
            pl.BlockSpec((1, 1), lambda i: (0, 0)),
        ],
        out_specs=pl.BlockSpec((tile_b, 1), lambda i: (i, 0)),
        compiler_params=pltpu.CompilerParams(
            # Batch axis is embarrassingly parallel -> megacore sharding on v7x.
            dimension_semantics=("parallel",),
            # Explicit limit: large tiles exceed v5e's 16 MiB default scoped
            # VMEM; 32 MiB fits every generation's physical VMEM comfortably.
            vmem_limit_bytes=32 * 1024 * 1024,
        ),
    )(
        x,
        fparams["w1f"], fparams["b1r"],
        fparams["w2f"], fparams["b2r"],
        fparams["w3r"], fparams["b3r"],
    )

    # (B_pad, 1) -> (B,); jnp.squeeze matches torch's x.squeeze() (0-d for B == 1).
    return jnp.squeeze(out[:B, 0])


# -----------------------------------------------------------------------------
# Pure-JAX reference (unfolded params) for the self-check.
# -----------------------------------------------------------------------------
def movie_rec_reference(user, item, genre, params, eps=1e-5):
    uv = params["user_emb"][user]
    iv = params["item_emb"][item]
    gv = genre @ params["wg"] + params["bg"]
    x = jnp.concatenate([uv, iv, gv], axis=1)
    h = jnp.maximum(x @ params["w1"] + params["b1"], 0.0)
    h = (h - params["bn1_mean"]) / jnp.sqrt(params["bn1_var"] + eps) \
        * params["bn1_gamma"] + params["bn1_beta"]
    h = jnp.maximum(h @ params["w2"] + params["b2"], 0.0)
    h = (h - params["bn2_mean"]) / jnp.sqrt(params["bn2_var"] + eps) \
        * params["bn2_gamma"] + params["bn2_beta"]
    out = h @ params["w3"] + params["b3"]
    return jnp.squeeze(out)


def init_params(key, num_users, num_items, num_genres, emb_dim=32):
    ks = jax.random.split(key, 12)
    f32 = jnp.float32

    def lin(kw, kb, fan_in, fan_out):
        bound = 1.0 / jnp.sqrt(fan_in)
        w = jax.random.uniform(kw, (fan_in, fan_out), f32, -bound, bound)
        b = jax.random.uniform(kb, (fan_out,), f32, -bound, bound)
        return w, b

    wg, bg = lin(ks[2], ks[3], num_genres, emb_dim)
    w1, b1 = lin(ks[4], ks[5], emb_dim * 3, 128)
    w2, b2 = lin(ks[6], ks[7], 128, 64)
    w3, b3 = lin(ks[8], ks[9], 64, 1)

    return {
        "user_emb": jax.random.normal(ks[0], (num_users, emb_dim), f32),
        "item_emb": jax.random.normal(ks[1], (num_items, emb_dim), f32),
        "wg": wg, "bg": bg,
        "w1": w1, "b1": b1,
        "bn1_gamma": jnp.ones((128,), f32),
        "bn1_beta": jnp.zeros((128,), f32),
        "bn1_mean": 0.05 * jax.random.normal(ks[10], (128,), f32),
        "bn1_var": jnp.ones((128,), f32) + 0.1,
        "w2": w2, "b2": b2,
        "bn2_gamma": jnp.ones((64,), f32),
        "bn2_beta": jnp.zeros((64,), f32),
        "bn2_mean": 0.05 * jax.random.normal(ks[11], (64,), f32),
        "bn2_var": jnp.ones((64,), f32) + 0.1,
        "w3": w3, "b3": b3,
    }


if __name__ == "__main__":
    NUM_USERS, NUM_ITEMS, NUM_GENRES, EMB_DIM = 50, 100, 16, 32
    B = 8

    key = jax.random.PRNGKey(0)
    ks = jax.random.split(key, 7)

    params = init_params(ks[0], NUM_USERS, NUM_ITEMS, NUM_GENRES, EMB_DIM)

    user = jax.random.randint(ks[1], (B,), 0, NUM_USERS, dtype=jnp.int32)
    item = jax.random.randint(ks[2], (B,), 0, NUM_ITEMS, dtype=jnp.int32)
    genre = jax.random.uniform(ks[3], (B, NUM_GENRES), jnp.float32)

    fwd = jax.jit(movie_rec_forward)
    ref = movie_rec_reference(user, item, genre, params)

    # --- f32 path: numerical check against the pure-JAX reference -----------
    fparams_f32 = fold_inference_params(params, compute_dtype=jnp.float32)
    out_f32 = fwd(user, item, genre, fparams_f32)
    jax.block_until_ready(out_f32)
    assert out_f32.shape == (B,), out_f32.shape
    assert jnp.allclose(out_f32, ref, rtol=2e-2, atol=2e-2)

    # --- bf16 path (default inference config) -------------------------------
    fparams_bf16 = fold_inference_params(params, compute_dtype=jnp.bfloat16)
    out_bf16 = fwd(user, item, genre, fparams_bf16)
    jax.block_until_ready(out_bf16)
    assert out_bf16.shape == (B,)
    assert bool(jnp.all(jnp.isfinite(out_bf16)))
    assert jnp.allclose(out_bf16, ref, rtol=1e-1, atol=1e-1)

    # --- larger batch exercising a multi-step grid + padded indices ----------
    B2 = 300
    user2 = jax.random.randint(ks[4], (B2,), 0, NUM_USERS, dtype=jnp.int32)
    item2 = jax.random.randint(ks[5], (B2,), 0, NUM_ITEMS, dtype=jnp.int32)
    genre2 = jax.random.uniform(ks[6], (B2, NUM_GENRES), jnp.float32)
    out2 = fwd(user2, item2, genre2, fparams_bf16)     # tile=256, grid=(2,), pad to 512
    jax.block_until_ready(out2)
    ref2 = movie_rec_reference(user2, item2, genre2, params)
    assert out2.shape == (B2,)
    assert jnp.allclose(out2, ref2, rtol=1e-1, atol=1e-1)

    print("KERNEL_OK")
</pallas_src>

<mosaic_0001>
module attributes {stable_mosaic.version = 11 : i64} {
  func.func @movie_rec_kernel(%arg0: i32, %arg1: memref<128x80xf32, #tpu.memory_space<vmem>>, %arg2: memref<80x128xf32, #tpu.memory_space<vmem>>, %arg3: memref<1x128xf32, #tpu.memory_space<vmem>>, %arg4: memref<128x64xf32, #tpu.memory_space<vmem>>, %arg5: memref<1x64xf32, #tpu.memory_space<vmem>>, %arg6: memref<1x64xf32, #tpu.memory_space<vmem>>, %arg7: memref<1x1xf32, #tpu.memory_space<vmem>>, %arg8: memref<128x1xf32, #tpu.memory_space<vmem>>) attributes {dimension_semantics = [#tpu.dimension_semantics<parallel>], iteration_bounds = array<i64: 1>, scalar_prefetch = 0 : i64, scratch_operands = 0 : i64, tpu.core_type = #tpu.core_type<tc>, window_params = [{transform_indices = @transform_0, window_bounds = array<i64: 128, 80>}, {pipeline_mode = #tpu.pipeline_mode<synchronous>, transform_indices = @transform_1, window_bounds = array<i64: 80, 128>}, {pipeline_mode = #tpu.pipeline_mode<synchronous>, transform_indices = @transform_2, window_bounds = array<i64: 1, 128>}, {pipeline_mode = #tpu.pipeline_mode<synchronous>, transform_indices = @transform_3, window_bounds = array<i64: 128, 64>}, {pipeline_mode = #tpu.pipeline_mode<synchronous>, transform_indices = @transform_4, window_bounds = array<i64: 1, 64>}, {pipeline_mode = #tpu.pipeline_mode<synchronous>, transform_indices = @transform_5, window_bounds = array<i64: 1, 64>}, {pipeline_mode = #tpu.pipeline_mode<synchronous>, transform_indices = @transform_6, window_bounds = array<i64: 1, 1>}, {transform_indices = @transform_7, window_bounds = array<i64: 128, 1>}]} {
    %c0 = arith.constant 0 : index
    %c0_0 = arith.constant 0 : index
    %0 = vector.load %arg1[%c0, %c0_0] : memref<128x80xf32, #tpu.memory_space<vmem>>, vector<128x80xf32>
    %c0_1 = arith.constant 0 : index
    %c0_2 = arith.constant 0 : index
    %1 = vector.load %arg2[%c0_1, %c0_2] : memref<80x128xf32, #tpu.memory_space<vmem>>, vector<80x128xf32>
    %cst = arith.constant dense<0.000000e+00> : vector<128x128xf32>
    %2 = tpu.matmul %0, %1, %cst {dimension_numbers = #tpu.dot_dimension_numbers<[1], [0], [0], [1], [0, 0, 1, 1], [], []>} : vector<128x80xf32>, vector<80x128xf32>, vector<128x128xf32> -> vector<128x128xf32>
    %c0_3 = arith.constant 0 : index
    %c0_4 = arith.constant 0 : index
    %3 = vector.load %arg3[%c0_3, %c0_4] : memref<1x128xf32, #tpu.memory_space<vmem>>, vector<1x128xf32>
    %4 = vector.broadcast %3 : vector<1x128xf32> to vector<128x128xf32>
    %5 = arith.addf %2, %4 : vector<128x128xf32>
    %cst_5 = arith.constant 0.000000e+00 : f32
    %6 = vector.broadcast %cst_5 : f32 to vector<128x128xf32>
    %7 = arith.maximumf %5, %6 : vector<128x128xf32>
    %c0_6 = arith.constant 0 : index
    %c0_7 = arith.constant 0 : index
    %8 = vector.load %arg4[%c0_6, %c0_7] : memref<128x64xf32, #tpu.memory_space<vmem>>, vector<128x64xf32>
    %cst_8 = arith.constant dense<0.000000e+00> : vector<128x64xf32>
    %9 = tpu.matmul %7, %8, %cst_8 {dimension_numbers = #tpu.dot_dimension_numbers<[1], [0], [0], [1], [0, 0, 1, 1], [], []>} : vector<128x128xf32>, vector<128x64xf32>, vector<128x64xf32> -> vector<128x64xf32>
    %c0_9 = arith.constant 0 : index
    %c0_10 = arith.constant 0 : index
    %10 = vector.load %arg5[%c0_9, %c0_10] : memref<1x64xf32, #tpu.memory_space<vmem>>, vector<1x64xf32>
    %11 = vector.broadcast %10 : vector<1x64xf32> to vector<128x64xf32>
    %12 = arith.addf %9, %11 : vector<128x64xf32>
    %cst_11 = arith.constant 0.000000e+00 : f32
    %13 = vector.broadcast %cst_11 : f32 to vector<128x64xf32>
    %14 = arith.maximumf %12, %13 : vector<128x64xf32>
    %c0_12 = arith.constant 0 : index
    %c0_13 = arith.constant 0 : index
    %15 = vector.load %arg6[%c0_12, %c0_13] : memref<1x64xf32, #tpu.memory_space<vmem>>, vector<1x64xf32>
    %16 = vector.broadcast %15 : vector<1x64xf32> to vector<128x64xf32>
    %17 = arith.mulf %14, %16 : vector<128x64xf32>
    %cst_14 = arith.constant dense<0.000000e+00> : vector<128xf32>
    %18 = vector.multi_reduction <add>, %17, %cst_14 [1] : vector<128x64xf32> to vector<128xf32>
    %19 = vector.shape_cast %18 : vector<128xf32> to vector<128x1xf32>
    %c0_15 = arith.constant 0 : index
    %c0_16 = arith.constant 0 : index
    %20 = vector.load %arg7[%c0_15, %c0_16] : memref<1x1xf32, #tpu.memory_space<vmem>>, vector<1x1xf32>
    %21 = vector.broadcast %20 : vector<1x1xf32> to vector<128x1xf32>
    %22 = arith.addf %19, %21 : vector<128x1xf32>
    %c0_17 = arith.constant 0 : index
    %c0_18 = arith.constant 0 : index
    %23 = vector.load %arg8[%c0_17, %c0_18] : memref<128x1xf32, #tpu.memory_space<vmem>>, vector<128x1xf32>
    tpu.vector_store %arg8[%c0_17, %c0_18], %22 {strides = array<i32>} : memref<128x1xf32, #tpu.memory_space<vmem>>, vector<128x1xf32>,
    return
  }
  func.func @transform_0(%arg0: i32) -> (i32, i32) {
    %c0_i32 = arith.constant 0 : i32
    %c0_i32_0 = arith.constant 0 : i32
    return %arg0, %c0_i32 : i32, i32
  }
  func.func @transform_1(%arg0: i32) -> (i32, i32) {
    %c0_i32 = arith.constant 0 : i32
    %c0_i32_0 = arith.constant 0 : i32
    %c0_i32_1 = arith.constant 0 : i32
    return %c0_i32, %c0_i32_0 : i32, i32
  }
  func.func @transform_2(%arg0: i32) -> (i32, i32) {
    %c0_i32 = arith.constant 0 : i32
    %c0_i32_0 = arith.constant 0 : i32
    %c0_i32_1 = arith.constant 0 : i32
    return %c0_i32, %c0_i32_0 : i32, i32
  }
  func.func @transform_3(%arg0: i32) -> (i32, i32) {
    %c0_i32 = arith.constant 0 : i32
    %c0_i32_0 = arith.constant 0 : i32
    %c0_i32_1 = arith.constant 0 : i32
    return %c0_i32, %c0_i32_0 : i32, i32
  }
  func.func @transform_4(%arg0: i32) -> (i32, i32) {
    %c0_i32 = arith.constant 0 : i32
    %c0_i32_0 = arith.constant 0 : i32
    %c0_i32_1 = arith.constant 0 : i32
    return %c0_i32, %c0_i32_0 : i32, i32
  }
  func.func @transform_5(%arg0: i32) -> (i32, i32) {
    %c0_i32 = arith.constant 0 : i32
    %c0_i32_0 = arith.constant 0 : i32
    %c0_i32_1 = arith.constant 0 : i32
    return %c0_i32, %c0_i32_0 : i32, i32
  }
  func.func @transform_6(%arg0: i32) -> (i32, i32) {
    %c0_i32 = arith.constant 0 : i32
    %c0_i32_0 = arith.constant 0 : i32
    %c0_i32_1 = arith.constant 0 : i32
    return %c0_i32, %c0_i32_0 : i32, i32
  }
  func.func @transform_7(%arg0: i32) -> (i32, i32) {
    %c0_i32 = arith.constant 0 : i32
    %c0_i32_0 = arith.constant 0 : i32
    return %arg0, %c0_i32 : i32, i32
  }
}

</mosaic_0001>

<bundles_post_ra>
// kernel: movie_rec_forward.1
= control target key start
LH: loop header
LB: loop body
LE: loop exit
PB: predicated region body
PF: predicated region fallthrough
CT: control target
= control target key end

     0   :  { %vm58_vm0 = vcmask 654336   ;;  %vm309_vm1 = vcmask 523264   ;;  %vm378_vm2 = vcmask 7168   ;;  %s789_s1 = inlined_call_operand.vmem [shape: f32[80,128], index: 1, kind: input, shape index: {}]   ;;  %s790_s2 = inlined_call_operand.vmem [shape: f32[1,128], index: 2, kind: input, shape index: {}]   ;;  %s791_s0 = inlined_call_operand.vmem [shape: f32[128,80], index: 0, kind: input, shape index: {}]   ;;  %s792_s3 = inlined_call_operand.vmem [shape: f32[128,64], index: 3, kind: input, shape index: {}]   ;;  %s793_s4 = inlined_call_operand.vmem [shape: f32[1,64], index: 4, kind: input, shape index: {}]   ;;  %s794_s5 = inlined_call_operand.vmem [shape: f32[1,64], index: 5, kind: input, shape index: {}]   ;;  %s795_s6 = inlined_call_operand.<no memory space> [shape: f32[1,1], index: 6, kind: input, shape index: {}]   ;;  %s796_s7 = inlined_call_operand.vmem [shape: f32[128,1], index: 7, kind: output, shape index: {}]  }
   0x1   :  { %v53_v0 = vld [vmem:[%s789_s1 + $0x48] sm:$0xff]  ;;  %v52_v1 = vld [vmem:[%s789_s1 + $0x40] sm:$0xff]  ;;  %v51_v2 = vld [vmem:[%s789_s1 + $0x38] sm:$0xff] }
   0x2   :  { %113 = vmatpush.msra.mxu0 %v53_v0  ;;  %415 = vmatpush.msra.mxu3 %v53_v0  ;;  %v50_v3 = vld [vmem:[%s789_s1 + $0x30] sm:$0xff]  ;;  %v49_v4 = vld [vmem:[%s789_s1 + $0x28] sm:$0xff]  ;;  %v48_v5 = vld [vmem:[%s789_s1 + $0x20] sm:$0xff] }
   0x3   :  { %v47_v6 = vld [vmem:[%s789_s1 + $0x18] sm:$0xff]  ;;  %v46_v7 = vld [vmem:[%s789_s1 + $0x10] sm:$0xff]  ;;  %v45_v8 = vld [vmem:[%s789_s1 + $0x8] sm:$0xff] }
   0x4   :  { %114 = vmatpush.msra.mxu0 %v52_v1  ;;  %416 = vmatpush.msra.mxu3 %v52_v1  ;;  %v44_v9 = vld [vmem:[%s789_s1] sm:$0xff]  ;;  %v29_v11 = vld [vmem:[%s791_s0 + $0x8] sm:$0xff]  ;;  %v30_v12 = vld [vmem:[%s791_s0 + $0x10] sm:$0xff] }
   0x5   :  { %v28_v10 = vld [vmem:[%s791_s0] sm:$0xff]  ;;  %v31_v13 = vld [vmem:[%s791_s0 + $0x18] sm:$0xff]  ;;  %v37_v14 = vld [vmem:[%s791_s0 + $0x48] sm:$0xff] }
   0x6   :  { %115 = vmatpush.msra.mxu0 %v51_v2  ;;  %417 = vmatpush.msra.mxu3 %v51_v2  ;;  %v32_v15 = vld [vmem:[%s791_s0 + $0x20] sm:$0xff]  ;;  %v38_v16 = vld [vmem:[%s791_s0 + $0x50] sm:$0xff]  ;;  %v203_v17 = vld [vmem:[%s792_s3 + $0x78] sm:$0xff] }
   0x7   :  { %208 = vmatpush.msra.mxu1 %v203_v17  ;;  %v202_v18 = vld [vmem:[%s792_s3 + $0x70] sm:$0xff]  ;;  %425 = vmatpush.msra.mxu2 %v203_v17  ;;  %v201_v19 = vld [vmem:[%s792_s3 + $0x68] sm:$0xff]  ;;  %v200_v21 = vld [vmem:[%s792_s3 + $0x60] sm:$0xff] }
   0x8   :  { %116 = vmatpush.msra.mxu0 %v50_v3  ;;  %418 = vmatpush.msra.mxu3 %v50_v3  ;;  %v33_v20 = vld [vmem:[%s791_s0 + $0x28] sm:$0xff]  ;;  %v39_v22 = vld [vmem:[%s791_s0 + $0x58] sm:$0xff]  ;;  %v198_v24 = vld [vmem:[%s792_s3 + $0x50] sm:$0xff] }
   0x9   :  { %209 = vmatpush.msra.mxu1 %v202_v18  ;;  %427 = vmatpush.msra.mxu2 %v202_v18  ;;  %v199_v23 = vld [vmem:[%s792_s3 + $0x58] sm:$0xff]  ;;  %v197_v25 = vld [vmem:[%s792_s3 + $0x48] sm:$0xff]  ;;  %v34_v26 = vld [vmem:[%s791_s0 + $0x30] sm:$0xff] }
   0xa   :  { %117 = vmatpush.msra.mxu0 %v49_v4  ;;  %419 = vmatpush.msra.mxu3 %v49_v4  ;;  %v196_v27 = vld [vmem:[%s792_s3 + $0x40] sm:$0xff]  ;;  %v195_v29 = vld [vmem:[%s792_s3 + $0x38] sm:$0xff]  ;;  %v194_v30 = vld [vmem:[%s792_s3 + $0x30] sm:$0xff] }
   0xb   :  { %210 = vmatpush.msra.mxu1 %v201_v19  ;;  %429 = vmatpush.msra.mxu2 %v201_v19  ;;  %v40_v28 = vld [vmem:[%s791_s0 + $0x60] sm:$0xff]  ;;  %v193_v31 = vld [vmem:[%s792_s3 + $0x28] sm:$0xff]  ;;  %v35_v32 = vld [vmem:[%s791_s0 + $0x38] sm:$0xff] }
   0xc   :  { %118 = vmatpush.msra.mxu0 %v48_v5  ;;  %420 = vmatpush.msra.mxu3 %v48_v5  ;;  %v192_v33 = vld [vmem:[%s792_s3 + $0x20] sm:$0xff]  ;;  %v41_v34 = vld [vmem:[%s791_s0 + $0x68] sm:$0xff]  ;;  %v191_v35 = vld [vmem:[%s792_s3 + $0x18] sm:$0xff] }
   0xd   :  { %211 = vmatpush.msra.mxu1 %v200_v21  ;;  %431 = vmatpush.msra.mxu2 %v200_v21  ;;  %v36_v36 = vld [vmem:[%s791_s0 + $0x40] sm:$0xff]  ;;  %v42_v37 = vld [vmem:[%s791_s0 + $0x70] sm:$0xff]  ;;  %v43_v38 = vld [vmem:[%s791_s0 + $0x78] sm:$0xff] }
   0xe   :  { %119 = vmatpush.msra.mxu0 %v47_v6  ;;  %421 = vmatpush.msra.mxu3 %v47_v6  ;;  %v190_v39 = vld [vmem:[%s792_s3 + $0x10] sm:$0xff]  ;;  %v189_v40 = vld [vmem:[%s792_s3 + $0x8] sm:$0xff]  ;;  %v188_v41 = vld [vmem:[%s792_s3] sm:$0xff] }
   0xf   :  { %212 = vmatpush.msra.mxu1 %v199_v23  ;;  %433 = vmatpush.msra.mxu2 %v199_v23  ;;  %v646_v42 = vld [vmem:[%s790_s2] ss:$0 sm:$0xff] }
  0x10   :  { %120 = vmatpush.msra.mxu0 %v46_v7  ;;  %422 = vmatpush.msra.mxu3 %v46_v7 }
  0x11   :  { %213 = vmatpush.msra.mxu1 %v198_v24  ;;  %435 = vmatpush.msra.mxu2 %v198_v24 }
  0x12   :  { %121 = vmatpush.msra.mxu0 %v45_v8  ;;  %423 = vmatpush.msra.mxu3 %v45_v8 }
  0x13   :  { %214 = vmatpush.msra.mxu1 %v197_v25  ;;  %437 = vmatpush.msra.mxu2 %v197_v25 }
  0x14   :  { %122 = vmatpush.msra.mxu0 %v44_v9  ;;  %424 = vmatpush.msra.mxu3 %v44_v9 }
  0x15   :  { %399 = vmatmul.msk.f32.vlgmr.msra.gmra.mxu0 %vm58_vm0, %v28_v10  ;;  %408 = vmatmul.msk.f32.vlgmr.msra.gmra.mxu3 %vm58_vm0, %v37_v14 }
  0x16   :  { %426 = vmatpush.msrb.mxu3 %v203_v17  ;;  %215 = vmatpush.msra.mxu1 %v196_v27 }
  0x17   :  { %439 = vmatpush.msra.mxu2 %v196_v27 }
  0x18   :  { %428 = vmatpush.msrb.mxu3 %v202_v18  ;;  %216 = vmatpush.msra.mxu1 %v195_v29 }
  0x19   :  { %441 = vmatpush.msra.mxu2 %v195_v29 }
  0x1a   :  { %430 = vmatpush.msrb.mxu3 %v201_v19  ;;  %217 = vmatpush.msra.mxu1 %v194_v30 }
  0x1b   :  { %443 = vmatpush.msra.mxu2 %v194_v30 }
  0x1c   :  { %432 = vmatpush.msrb.mxu3 %v200_v21  ;;  %218 = vmatpush.msra.mxu1 %v193_v31 }
  0x1d   :  { %400 = vmatmul.msk.f32.gmra.mxu0 %vm58_vm0, %v29_v11  ;;  %409 = vmatmul.msk.f32.gmra.mxu3 %vm58_vm0, %v38_v16 }
  0x1e   :  { %434 = vmatpush.msrb.mxu3 %v199_v23  ;;  %445 = vmatpush.msra.mxu2 %v193_v31 }
  0x1f   :  { %219 = vmatpush.msra.mxu1 %v192_v33 }
  0x20   :  { %436 = vmatpush.msrb.mxu3 %v198_v24  ;;  %447 = vmatpush.msra.mxu2 %v192_v33 }
  0x21   :  { %220 = vmatpush.msra.mxu1 %v191_v35 }
  0x22   :  { %438 = vmatpush.msrb.mxu3 %v197_v25  ;;  %449 = vmatpush.msra.mxu2 %v191_v35 }
  0x23   :  { %221 = vmatpush.msra.mxu1 %v190_v39 }
  0x24   :  { %440 = vmatpush.msrb.mxu3 %v196_v27  ;;  %451 = vmatpush.msra.mxu2 %v190_v39  ;;  %v667_v27 = vld [vmem:[%s793_s4] ss:$0 sm:$0xff] }
  0x25   :  { %401 = vmatmul.msk.f32.gmra.mxu0 %vm58_vm0, %v30_v12  ;;  %410 = vmatmul.msk.f32.gmra.mxu3 %vm58_vm0, %v39_v22 }
  0x26   :  { %442 = vmatpush.msrb.mxu3 %v195_v29  ;;  %222 = vmatpush.msra.mxu1 %v189_v40 }
  0x27   :  { %453 = vmatpush.msra.mxu2 %v189_v40 }
  0x28   :  { %444 = vmatpush.msrb.mxu3 %v194_v30  ;;  %223 = vmatpush.msra.mxu1 %v188_v41  ;;  %v673_v30 = vld [vmem:[%s794_s5] ss:$0 sm:$0xff] }
  0x29   :  { %455 = vmatpush.msra.mxu2 %v188_v41 }
  0x2a   :  { %446 = vmatpush.msrb.mxu3 %v193_v31 }
  0x2c   :  { %448 = vmatpush.msrb.mxu3 %v192_v33 }
  0x2d   :  { %402 = vmatmul.msk.f32.gmra.mxu0 %vm58_vm0, %v31_v13  ;;  %411 = vmatmul.msk.f32.gmra.mxu3 %vm58_vm0, %v40_v28 }
  0x2e   :  { %450 = vmatpush.msrb.mxu3 %v191_v35 }
  0x30   :  { %452 = vmatpush.msrb.mxu3 %v190_v39 }
  0x32   :  { %454 = vmatpush.msrb.mxu3 %v189_v40 }
  0x34   :  { %456 = vmatpush.msrb.mxu3 %v188_v41 }
  0x35   :  { %403 = vmatmul.msk.f32.gmra.mxu0 %vm58_vm0, %v32_v15  ;;  %412 = vmatmul.msk.f32.gmra.mxu3 %vm58_vm0, %v41_v34 }
  0x3d   :  { %404 = vmatmul.msk.f32.gmra.mxu0 %vm58_vm0, %v33_v20  ;;  %413 = vmatmul.msk.f32.gmra.mxu3 %vm58_vm0, %v42_v37 }
  0x45   :  { %405 = vmatmul.msk.f32.gmra.mxu0 %vm58_vm0, %v34_v26  ;;  %414 = vmatmul.msk.f32.gmra.mxu3 %vm58_vm0, %v43_v38 }
  0x4d   :  { %406 = vmatmul.msk.f32.gmra.mxu0 %vm58_vm0, %v35_v32 }
  0x55   :  { %407 = vmatmul.msk.f32.gmra.mxu0 %vm58_vm0, %v36_v36 }
  0x92   :  { %v124_v43 = vpop.f32.mrf.mxu0 }
  0x93   :  { %v125_v44 = vadd.f32 %v646_v42, %v124_v43 }
  0x95   :  { %v172_v45 = vmax.f32 %v125_v44, 0.0 }
  0x97   :  { %224 = vmatmul.f32.vlgmr.msra.gmra.mxu1 %v172_v45 }
  0x98   :  { %v151_v56 = vpop.f32.mrf.mxu3 }
  0x99   :  { %v152_v11 = vadd.f32 %v646_v42, %v151_v56 }
  0x9a   :  { %v127_v46 = vpop.f32.mrf.mxu0 }
  0x9b   :  { %v128_v47 = vadd.f32 %v646_v42, %v127_v46  ;;  %v181_v13 = vmax.f32 %v152_v11, 0.0 }
  0x9d   :  { %v173_v48 = vmax.f32 %v128_v47, 0.0 }
  0x9f   :  { %227 = vmatmul.f32.gmra.mxu1 %v173_v48 }
  0xa0   :  { %v154_v60 = vpop.f32.mrf.mxu3 }
  0xa1   :  { %v155_v14 = vadd.f32 %v646_v42, %v154_v60 }
  0xa2   :  { %v130_v49 = vpop.f32.mrf.mxu0 }
  0xa3   :  { %v131_v50 = vadd.f32 %v646_v42, %v130_v49  ;;  %v182_v17 = vmax.f32 %v155_v14, 0.0 }
  0xa5   :  { %v174_v51 = vmax.f32 %v131_v50, 0.0 }
  0xa7   :  { %230 = vmatmul.f32.gmra.mxu1 %v174_v51 }
  0xa8   :  { %v157_v0 = vpop.f32.mrf.mxu3 }
  0xa9   :  { %v158_v19 = vadd.f32 %v646_v42, %v157_v0 }
  0xaa   :  { %v133_v52 = vpop.f32.mrf.mxu0 }
  0xab   :  { %v134_v53 = vadd.f32 %v646_v42, %v133_v52  ;;  %v183_v20 = vmax.f32 %v158_v19, 0.0 }
  0xad   :  { %v175_v54 = vmax.f32 %v134_v53, 0.0 }
  0xaf   :  { %233 = vmatmul.f32.gmra.mxu1 %v175_v54 }
  0xb0   :  { %v160_v4 = vpop.f32.mrf.mxu3 }
  0xb1   :  { %v161_v21 = vadd.f32 %v646_v42, %v160_v4 }
  0xb2   :  { %v136_v55 = vpop.f32.mrf.mxu0 }
  0xb3   :  { %v137_v57 = vadd.f32 %v646_v42, %v136_v55  ;;  %v184_v22 = vmax.f32 %v161_v21, 0.0 }
  0xb5   :  { %v176_v58 = vmax.f32 %v137_v57, 0.0 }
  0xb7   :  { %236 = vmatmul.f32.gmra.mxu1 %v176_v58 }
  0xb8   :  { %v163_v8 = vpop.f32.mrf.mxu3 }
  0xb9   :  { %v164_v23 = vadd.f32 %v646_v42, %v163_v8 }
  0xba   :  { %v139_v59 = vpop.f32.mrf.mxu0 }
  0xbb   :  { %v140_v61 = vadd.f32 %v646_v42, %v139_v59  ;;  %v185_v24 = vmax.f32 %v164_v23, 0.0 }
  0xbd   :  { %v177_v62 = vmax.f32 %v140_v61, 0.0 }
  0xbf   :  { %239 = vmatmul.f32.gmra.mxu1 %v177_v62 }
  0xc0   :  { %v166_v12 = vpop.f32.mrf.mxu3 }
  0xc1   :  { %v167_v25 = vadd.f32 %v646_v42, %v166_v12 }
  0xc2   :  { %v142_v63 = vpop.f32.mrf.mxu0 }
  0xc3   :  { %v143_v1 = vadd.f32 %v646_v42, %v142_v63  ;;  %v186_v26 = vmax.f32 %v167_v25, 0.0 }
  0xc5   :  { %v178_v2 = vmax.f32 %v143_v1, 0.0 }
  0xc7   :  { %242 = vmatmul.f32.gmra.mxu1 %v178_v2 }
  0xc8   :  { %v169_v15 = vpop.f32.mrf.mxu3 }
  0xc9   :  { %v170_v16 = vadd.f32 %v646_v42, %v169_v15 }
  0xca   :  { %v145_v3 = vpop.f32.mrf.mxu0 }
  0xcb   :  { %v146_v5 = vadd.f32 %v646_v42, %v145_v3  ;;  %v187_v18 = vmax.f32 %v170_v16, 0.0 }
  0xcd   :  { %v179_v6 = vmax.f32 %v146_v5, 0.0  ;;  %269 = vmatmul.f32.vlgmr.msrb.gmra.mxu3 %v187_v18 }
  0xcf   :  { %245 = vmatmul.f32.vlgmr.msra.gmra.mxu2 %v179_v6 }
  0xd2   :  { %v148_v7 = vpop.f32.mrf.mxu0 }
  0xd3   :  { %v149_v9 = vadd.f32 %v646_v42, %v148_v7 }
  0xd5   :  { %v180_v10 = vmax.f32 %v149_v9, 0.0 }
  0xd7   :  { %248 = vmatmul.f32.gmra.mxu2 %v180_v10 }
  0xdf   :  { %251 = vmatmul.f32.gmra.mxu2 %v181_v13  ;;  %v12_v13 = vstv %s795_s6 }
  0xe0   :  { %13 = vst [vmem:[#allocation2] sm:$0x1] %v12_v13 }
  0xe7   :  { %254 = vmatmul.f32.gmra.mxu2 %v182_v17 }
  0xef   :  { %257 = vmatmul.f32.gmra.mxu2 %v183_v20 }
  0xf7   :  { %260 = vmatmul.f32.gmra.mxu2 %v184_v22 }
  0xff   :  { %263 = vmatmul.f32.gmra.mxu2 %v185_v24 }
 0x107   :  { %266 = vmatmul.f32.gmra.mxu2 %v186_v26 }
 0x114   :  { %v225_v28 = vpop.f32.mrf.mxu1 }
 0x115   :  { %v226_v29 = vadd.f32 %v667_v27, %v225_v28 }
 0x117   :  { %v273_v31 = vmax.f32 %v226_v29, 0.0 }
 0x119   :  { %v293_v32 = vmul.f32 %v673_v30, %v273_v31 }
 0x11b   :  { %v310_v33 = vsel %vm309_vm1, %v293_v32, 0.0 }
 0x11c   :  { %v228_v34 = vpop.f32.mrf.mxu1  ;;  %311 = vadd.xlane.f32.xlu0 %v310_v33 }
 0x11d   :  { %v229_v35 = vadd.f32 %v667_v27, %v228_v34 }
 0x11f   :  { %v274_v36 = vmax.f32 %v229_v35, 0.0 }
 0x121   :  { %v294_v37 = vmul.f32 %v673_v30, %v274_v36 }
 0x123   :  { %v313_v38 = vsel %vm309_vm1, %v294_v37, 0.0 }
 0x124   :  { %v231_v39 = vpop.f32.mrf.mxu1  ;;  %314 = vadd.xlane.f32.xlu0 %v313_v38 }
 0x125   :  { %v232_v40 = vadd.f32 %v667_v27, %v231_v39 }
 0x127   :  { %v275_v41 = vmax.f32 %v232_v40, 0.0 }
 0x129   :  { %v295_v42 = vmul.f32 %v673_v30, %v275_v41 }
 0x12b   :  { %v316_v43 = vsel %vm309_vm1, %v295_v42, 0.0 }
 0x12c   :  { %v234_v44 = vpop.f32.mrf.mxu1  ;;  %317 = vadd.xlane.f32.xlu1 %v316_v43 }
 0x12d   :  { %v235_v45 = vadd.f32 %v667_v27, %v234_v44 }
 0x12f   :  { %v276_v46 = vmax.f32 %v235_v45, 0.0  ;;  %v460_v45 = vld [vmem:[#allocation2] ss:$0 sm:$0xff] }
 0x131   :  { %v296_v47 = vmul.f32 %v673_v30, %v276_v46 }
 0x133   :  { %v319_v48 = vsel %vm309_vm1, %v296_v47, 0.0 }
 0x134   :  { %v237_v49 = vpop.f32.mrf.mxu1  ;;  %320 = vadd.xlane.f32.xlu1 %v319_v48 }
 0x135   :  { %v238_v50 = vadd.f32 %v667_v27, %v237_v49 }
 0x137   :  { %v277_v51 = vmax.f32 %v238_v50, 0.0 }
 0x139   :  { %v297_v52 = vmul.f32 %v673_v30, %v277_v51 }
 0x13b   :  { %v322_v53 = vsel %vm309_vm1, %v297_v52, 0.0 }
 0x13c   :  { %v240_v54 = vpop.f32.mrf.mxu1  ;;  %323 = vadd.xlane.f32.xlu2 %v322_v53 }
 0x13d   :  { %v241_v55 = vadd.f32 %v667_v27, %v240_v54 }
 0x13f   :  { %v278_v56 = vmax.f32 %v241_v55, 0.0 }
 0x141   :  { %v298_v57 = vmul.f32 %v673_v30, %v278_v56 }
 0x143   :  { %v325_v58 = vsel %vm309_vm1, %v298_v57, 0.0 }
 0x144   :  { %v243_v59 = vpop.f32.mrf.mxu1  ;;  %326 = vadd.xlane.f32.xlu2 %v325_v58 }
 0x145   :  { %v244_v60 = vadd.f32 %v667_v27, %v243_v59 }
 0x147   :  { %v279_v61 = vmax.f32 %v244_v60, 0.0 }
 0x149   :  { %v299_v62 = vmul.f32 %v673_v30, %v279_v61 }
 0x14b   :  { %v328_v63 = vsel %vm309_vm1, %v299_v62, 0.0 }
 0x14c   :  { %329 = vadd.xlane.f32.xlu0 %v328_v63 }
 0x150   :  { %v270_v25 = vpop.f32.mrf.mxu3 }
 0x151   :  { %v271_v31 = vadd.f32 %v667_v27, %v270_v25 }
 0x152   :  { %v246_v0 = vpop.f32.mrf.mxu2 }
 0x153   :  { %v247_v1 = vadd.f32 %v667_v27, %v246_v0  ;;  %v288_v34 = vmax.f32 %v271_v31, 0.0 }
 0x155   :  { %v280_v2 = vmax.f32 %v247_v1, 0.0  ;;  %v308_v38 = vmul.f32 %v673_v30, %v288_v34 }
 0x157   :  { %v300_v3 = vmul.f32 %v673_v30, %v280_v2  ;;  %v355_v41 = vsel %vm309_vm1, %v308_v38, 0.0 }
 0x159   :  { %v331_v4 = vsel %vm309_vm1, %v300_v3, 0.0 }
 0x15a   :  { %v249_v5 = vpop.f32.mrf.mxu2  ;;  %332 = vadd.xlane.f32.xlu1 %v331_v4 }
 0x15b   :  { %v250_v6 = vadd.f32 %v667_v27, %v249_v5 }
 0x15d   :  { %v281_v7 = vmax.f32 %v250_v6, 0.0 }
 0x15f   :  { %v301_v8 = vmul.f32 %v673_v30, %v281_v7 }
 0x161   :  { %v334_v9 = vsel %vm309_vm1, %v301_v8, 0.0 }
 0x162   :  { %v252_v10 = vpop.f32.mrf.mxu2  ;;  %335 = vadd.xlane.f32.xlu2 %v334_v9 }
 0x163   :  { %v253_v11 = vadd.f32 %v667_v27, %v252_v10 }
 0x165   :  { %v282_v12 = vmax.f32 %v253_v11, 0.0 }
 0x167   :  { %v302_v14 = vmul.f32 %v673_v30, %v282_v12 }
 0x169   :  { %v337_v15 = vsel %vm309_vm1, %v302_v14, 0.0 }
 0x16a   :  { %v255_v16 = vpop.f32.mrf.mxu2  ;;  %338 = vadd.xlane.f32.xlu0 %v337_v15 }
 0x16b   :  { %v256_v17 = vadd.f32 %v667_v27, %v255_v16 }
 0x16d   :  { %v283_v18 = vmax.f32 %v256_v17, 0.0 }
 0x16f   :  { %v303_v19 = vmul.f32 %v673_v30, %v283_v18 }
 0x171   :  { %v340_v20 = vsel %vm309_vm1, %v303_v19, 0.0 }
 0x172   :  { %v258_v21 = vpop.f32.mrf.mxu2  ;;  %341 = vadd.xlane.f32.xlu1 %v340_v20 }
 0x173   :  { %v259_v22 = vadd.f32 %v667_v27, %v258_v21 }
 0x175   :  { %v284_v23 = vmax.f32 %v259_v22, 0.0 }
 0x177   :  { %v304_v24 = vmul.f32 %v673_v30, %v284_v23 }
 0x179   :  { %v343_v26 = vsel %vm309_vm1, %v304_v24, 0.0 }
 0x17a   :  { %v261_v28 = vpop.f32.mrf.mxu2  ;;  %344 = vadd.xlane.f32.xlu2 %v343_v26 }
 0x17b   :  { %v262_v29 = vadd.f32 %v667_v27, %v261_v28 }
 0x17d   :  { %v285_v32 = vmax.f32 %v262_v29, 0.0 }
 0x17f   :  { %v305_v33 = vmul.f32 %v673_v30, %v285_v32 }
 0x181   :  { %v346_v35 = vsel %vm309_vm1, %v305_v33, 0.0 }
 0x182   :  { %v264_v36 = vpop.f32.mrf.mxu2  ;;  %347 = vadd.xlane.f32.xlu0 %v346_v35 }
 0x183   :  { %v265_v37 = vadd.f32 %v667_v27, %v264_v36 }
 0x185   :  { %v286_v39 = vmax.f32 %v265_v37, 0.0 }
 0x187   :  { %v306_v40 = vmul.f32 %v673_v30, %v286_v39 }
 0x189   :  { %v349_v42 = vsel %vm309_vm1, %v306_v40, 0.0 }
 0x18a   :  { %v267_v43 = vpop.f32.mrf.mxu2  ;;  %350 = vadd.xlane.f32.xlu1 %v349_v42  ;;  %356 = vadd.xlane.f32.xlu0 %v355_v41 }
 0x18b   :  { %v268_v44 = vadd.f32 %v667_v27, %v267_v43 }
 0x18d   :  { %v287_v46 = vmax.f32 %v268_v44, 0.0 }
 0x18f   :  { %v312_v47 = vpop.xlane.xlu0 %311  ;;  %v307_v48 = vmul.f32 %v673_v30, %v287_v46 }
 0x190   :  { %v362_v49 = vadd.f32 %v460_v45, %v312_v47 }
 0x191   :  { %v352_v50 = vsel %vm309_vm1, %v307_v48, 0.0 }
 0x192   :  { %379 = vst.msk [vmem:[%s796_s7] sm:$0xff] %vm378_vm2, %v362_v49  ;;  %353 = vadd.xlane.f32.xlu2 %v352_v50 }
 0x197   :  { %v315_v51 = vpop.xlane.xlu0 %314 }
 0x198   :  { %v363_v52 = vadd.f32 %v460_v45, %v315_v51 }
 0x19a   :  { %380 = vst.msk [vmem:[%s796_s7 + $0x8] sm:$0xff] %vm378_vm2, %v363_v52 }
 0x19f   :  { %v318_v27 = vpop.xlane.xlu1 %317 }
 0x1a0   :  { %v364_v53 = vadd.f32 %v460_v45, %v318_v27 }
 0x1a2   :  { %381 = vst.msk [vmem:[%s796_s7 + $0x10] sm:$0xff] %vm378_vm2, %v364_v53 }
 0x1a7   :  { %v321_v30 = vpop.xlane.xlu1 %320 }
 0x1a8   :  { %v365_v54 = vadd.f32 %v460_v45, %v321_v30 }
 0x1aa   :  { %382 = vst.msk [vmem:[%s796_s7 + $0x18] sm:$0xff] %vm378_vm2, %v365_v54 }
 0x1af   :  { %v324_v55 = vpop.xlane.xlu2 %323 }
 0x1b0   :  { %v366_v56 = vadd.f32 %v460_v45, %v324_v55 }
 0x1b2   :  { %383 = vst.msk [vmem:[%s796_s7 + $0x20] sm:$0xff] %vm378_vm2, %v366_v56 }
 0x1b7   :  { %v327_v57 = vpop.xlane.xlu2 %326 }
 0x1b8   :  { %v367_v58 = vadd.f32 %v460_v45, %v327_v57 }
 0x1ba   :  { %384 = vst.msk [vmem:[%s796_s7 + $0x28] sm:$0xff] %vm378_vm2, %v367_v58 }
 0x1bf   :  { %v330_v59 = vpop.xlane.xlu0 %329 }
 0x1c0   :  { %v368_v60 = vadd.f32 %v460_v45, %v330_v59 }
 0x1c2   :  { %385 = vst.msk [vmem:[%s796_s7 + $0x30] sm:$0xff] %vm378_vm2, %v368_v60 }
 0x1cd   :  { %v333_v61 = vpop.xlane.xlu1 %332 }
 0x1ce   :  { %v369_v62 = vadd.f32 %v460_v45, %v333_v61 }
 0x1d0   :  { %386 = vst.msk [vmem:[%s796_s7 + $0x38] sm:$0xff] %vm378_vm2, %v369_v62 }
 0x1d5   :  { %v336_v63 = vpop.xlane.xlu2 %335 }
 0x1d6   :  { %v370_v0 = vadd.f32 %v460_v45, %v336_v63 }
 0x1d8   :  { %387 = vst.msk [vmem:[%s796_s7 + $0x40] sm:$0xff] %vm378_vm2, %v370_v0 }
 0x1dd   :  { %v339_v1 = vpop.xlane.xlu0 %338 }
 0x1de   :  { %v371_v2 = vadd.f32 %v460_v45, %v339_v1 }
 0x1e0   :  { %388 = vst.msk [vmem:[%s796_s7 + $0x48] sm:$0xff] %vm378_vm2, %v371_v2 }
 0x1e5   :  { %v342_v3 = vpop.xlane.xlu1 %341 }
 0x1e6   :  { %v372_v4 = vadd.f32 %v460_v45, %v342_v3 }
 0x1e8   :  { %389 = vst.msk [vmem:[%s796_s7 + $0x50] sm:$0xff] %vm378_vm2, %v372_v4 }
 0x1ed   :  { %v345_v5 = vpop.xlane.xlu2 %344 }
 0x1ee   :  { %v373_v6 = vadd.f32 %v460_v45, %v345_v5 }
 0x1f0   :  { %390 = vst.msk [vmem:[%s796_s7 + $0x58] sm:$0xff] %vm378_vm2, %v373_v6 }
 0x1f5   :  { %v348_v7 = vpop.xlane.xlu0 %347 }
 0x1f6   :  { %v374_v8 = vadd.f32 %v460_v45, %v348_v7 }
 0x1f8   :  { %391 = vst.msk [vmem:[%s796_s7 + $0x60] sm:$0xff] %vm378_vm2, %v374_v8 }
 0x1fd   :  { %v351_v9 = vpop.xlane.xlu1 %350  ;;  %v357_v10 = vpop.xlane.xlu0 %356 }
 0x1fe   :  { %v375_v11 = vadd.f32 %v460_v45, %v351_v9  ;;  %v377_v12 = vadd.f32 %v460_v45, %v357_v10 }
 0x200   :  { %392 = vst.msk [vmem:[%s796_s7 + $0x68] sm:$0xff] %vm378_vm2, %v375_v11 }
 0x201   :  { %394 = vst.msk [vmem:[%s796_s7 + $0x78] sm:$0xff] %vm378_vm2, %v377_v12 }
 0x205   :  { %v354_v13 = vpop.xlane.xlu2 %353 }
 0x206   :  { %v376_v14 = vadd.f32 %v460_v45, %v354_v13 }
 0x208   :  { %393 = vst.msk [vmem:[%s796_s7 + $0x70] sm:$0xff] %vm378_vm2, %v376_v14 }

</bundles_post_ra>
